<compile_context>
chip_gen: v5e
topology: v5e:2x2
jax: 0.10.0
libtpu: 0.0.40
codegen_flags: <defaults>
</compile_context>

<pallas_src>
import jax
import jax.numpy as jnp
from jax import lax
from jax.experimental import pallas as pl
from jax.experimental.pallas import tpu as pltpu

BN_EPS = 1e-5
LANE = 128
VMEM_LIMIT = 32 * 1024 * 1024  # safe on v5e/v6e (128 MiB) and v7x (64 MiB physical)


# ----------------------------------------------------------------------------
# Small helpers
# ----------------------------------------------------------------------------
def _cdiv(a, b):
    return -(-a // b)


def _round_up(x, m):
    return ((x + m - 1) // m) * m


def _pad2(a, rows, cols):
    return jnp.pad(a, ((0, rows - a.shape[0]), (0, cols - a.shape[1])))


def _choose_tiles(batch, target_rows, min_programs=1):
    """Batch tiling with a nearly-full last tile (avoids round_up(B, TB) blow-up)."""
    nt = max(min_programs, _cdiv(batch, target_rows))
    tb = _round_up(_cdiv(batch, nt), 16)   # multiple of 16 rows (bf16 sublane tile)
    return tb, nt, nt * tb


def _compiler_params(semantics):
    return pltpu.CompilerParams(
        dimension_semantics=semantics, vmem_limit_bytes=VMEM_LIMIT)


# ----------------------------------------------------------------------------
# Fused single-call kernel (h1/h2 stay resident in VMEM scratch)
# ----------------------------------------------------------------------------
def _make_fused_kernel(batch, tb, hp):
    inv_b = 1.0 / float(batch)

    def kernel(x_ref, w1_ref, b1_ref, g1_ref, be1_ref,
               w2_ref, b2_ref, g2_ref, be2_ref, w3_ref, b3_ref,
               o_ref, h1_buf, h2_buf, s1_buf, s2_buf):
        phase = pl.program_id(0)
        tile = pl.program_id(1)

        @pl.when(jnp.logical_and(phase == 0, tile == 0))
        def _():
            s1_buf[...] = jnp.zeros_like(s1_buf)
            s2_buf[...] = jnp.zeros_like(s2_buf)

        # Deterministic contents for the intermediate (phase 0/1) output write-backs;
        # phase 2 overwrites with the real logits below.
        o_ref[...] = jnp.zeros_like(o_ref)

        # Row mask: padded batch rows (>= B) carry broadcast bias and must not
        # contaminate the BatchNorm statistics.
        rid = lax.broadcasted_iota(jnp.int32, (tb, hp), 0) + tile * tb
        inb = rid < batch

        def accum_stats(h32, s_buf):
            hm = jnp.where(inb, h32, 0.0)
            s_buf[0:1, :] += jnp.sum(hm, axis=0, keepdims=True)
            s_buf[1:2, :] += jnp.sum(hm * h32, axis=0, keepdims=True)

        def scale_shift(s_buf, g, be):
            mean = s_buf[0:1, :] * inv_b
            var = jnp.maximum(s_buf[1:2, :] * inv_b - mean * mean, 0.0)
            scale = g * lax.rsqrt(var + BN_EPS)
            shift = be - mean * scale
            return scale, shift

        @pl.when(phase == 0)
        def _():
            h = jnp.dot(x_ref[...], w1_ref[...],
                        preferred_element_type=jnp.float32) + b1_ref[...]
            hr = h.astype(jnp.bfloat16)
            accum_stats(hr.astype(jnp.float32), s1_buf)
            h1_buf[tile] = hr

        @pl.when(phase == 1)
        def _():
            scale, shift = scale_shift(s1_buf, g1_ref[...], be1_ref[...])
            a = jnp.maximum(h1_buf[tile].astype(jnp.float32) * scale + shift, 0.0)
            h = jnp.dot(a.astype(jnp.bfloat16), w2_ref[...],
                        preferred_element_type=jnp.float32) + b2_ref[...]
            hr = h.astype(jnp.bfloat16)
            accum_stats(hr.astype(jnp.float32), s2_buf)
            h2_buf[tile] = hr

        @pl.when(phase == 2)
        def _():
            scale, shift = scale_shift(s2_buf, g2_ref[...], be2_ref[...])
            a = jnp.maximum(h2_buf[tile].astype(jnp.float32) * scale + shift, 0.0)
            a = a.astype(jnp.bfloat16).astype(jnp.float32)
            # N=1 head: VPU multiply + lane reduce (no degenerate 1-row MXU call).
            logits = jnp.sum(a * w3_ref[...].astype(jnp.float32),
                             axis=1, keepdims=True)          # (tb, 1)
            o_ref[...] = (logits + b3_ref[0, 0]).astype(o_ref.dtype)

    return kernel


def _call_fused(xp, w1p, b1p, g1p, be1p, w2p, b2p, g2p, be2p, w3p, b3,
                *, B, TB, NT, HP, TP):
    BP = NT * TB
    vec = lambda: pl.BlockSpec((1, HP), lambda p, i: (0, 0))
    return pl.pallas_call(
        _make_fused_kernel(B, TB, HP),
        out_shape=jax.ShapeDtypeStruct((BP, 1), jnp.float32),
        grid_spec=pltpu.PrefetchScalarGridSpec(
            num_scalar_prefetch=0,
            grid=(3, NT),
            in_specs=[
                pl.BlockSpec((TB, TP), lambda p, i: (i, 0)),   # x
                pl.BlockSpec((TP, HP), lambda p, i: (0, 0)),   # w1
                vec(), vec(), vec(),                           # b1, gamma1, beta1
                pl.BlockSpec((HP, HP), lambda p, i: (0, 0)),   # w2
                vec(), vec(), vec(),                           # b2, gamma2, beta2
                vec(),                                         # w3 row
                pl.BlockSpec(memory_space=pltpu.MemorySpace.SMEM),  # b3 (1,1)
            ],
            out_specs=pl.BlockSpec((TB, 1), lambda p, i: (i, 0)),
            scratch_shapes=[
                pltpu.VMEM((NT, TB, HP), jnp.bfloat16),        # h1 resident
                pltpu.VMEM((NT, TB, HP), jnp.bfloat16),        # h2 resident
                pltpu.VMEM((2, HP), jnp.float32),              # BN1 sum / sumsq
                pltpu.VMEM((2, HP), jnp.float32),              # BN2 sum / sumsq
            ]),
        compiler_params=_compiler_params(("arbitrary", "arbitrary")),
    )(xp, w1p, b1p, g1p, be1p, w2p, b2p, g2p, be2p, w3p, b3)


# ----------------------------------------------------------------------------
# Tiled fallback kernels (large batches): bf16 activations + in-kernel BN partials
# ----------------------------------------------------------------------------
def _make_linear_stats_kernel(batch, tb):
    def kernel(x_ref, w_ref, b_ref, h_ref, st_ref):
        i = pl.program_id(0)
        h = jnp.dot(x_ref[...], w_ref[...],
                    preferred_element_type=jnp.float32) + b_ref[...]
        hr = h.astype(jnp.bfloat16)
        h32 = hr.astype(jnp.float32)
        rid = lax.broadcasted_iota(jnp.int32, h32.shape, 0) + i * tb
        hm = jnp.where(rid < batch, h32, 0.0)
        st_ref[0, 0:1, :] = jnp.sum(hm, axis=0, keepdims=True)
        st_ref[0, 1:2, :] = jnp.sum(hm * h32, axis=0, keepdims=True)
        h_ref[...] = hr
    return kernel


def _make_bn_linear_stats_kernel(batch, tb):
    def kernel(h_ref, s_ref, t_ref, w_ref, b_ref, o_ref, st_ref):
        i = pl.program_id(0)
        a = jnp.maximum(h_ref[...].astype(jnp.float32) * s_ref[...] + t_ref[...], 0.0)
        h = jnp.dot(a.astype(jnp.bfloat16), w_ref[...],
                    preferred_element_type=jnp.float32) + b_ref[...]
        hr = h.astype(jnp.bfloat16)
        h32 = hr.astype(jnp.float32)
        rid = lax.broadcasted_iota(jnp.int32, h32.shape, 0) + i * tb
        hm = jnp.where(rid < batch, h32, 0.0)
        st_ref[0, 0:1, :] = jnp.sum(hm, axis=0, keepdims=True)
        st_ref[0, 1:2, :] = jnp.sum(hm * h32, axis=0, keepdims=True)
        o_ref[...] = hr
    return kernel


def _head_kernel(h_ref, s_ref, t_ref, w_ref, b_ref, o_ref):
    a = jnp.maximum(h_ref[...].astype(jnp.float32) * s_ref[...] + t_ref[...], 0.0)
    a = a.astype(jnp.bfloat16).astype(jnp.float32)
    logits = jnp.sum(a * w_ref[...].astype(jnp.float32), axis=1, keepdims=True)
    o_ref[...] = (logits + b_ref[0, 0]).astype(o_ref.dtype)


def _call_linear_stats(x, w, b, *, B, TB, NT):
    BP, TP = x.shape
    HP = w.shape[1]
    return pl.pallas_call(
        _make_linear_stats_kernel(B, TB),
        out_shape=(jax.ShapeDtypeStruct((BP, HP), jnp.bfloat16),
                   jax.ShapeDtypeStruct((NT, 2, HP), jnp.float32)),
        grid_spec=pltpu.PrefetchScalarGridSpec(
            num_scalar_prefetch=0,
            grid=(NT,),
            in_specs=[pl.BlockSpec((TB, TP), lambda i: (i, 0)),
                      pl.BlockSpec((TP, HP), lambda i: (0, 0)),
                      pl.BlockSpec((1, HP), lambda i: (0, 0))],
            out_specs=[pl.BlockSpec((TB, HP), lambda i: (i, 0)),
                       pl.BlockSpec((1, 2, HP), lambda i: (i, 0, 0))]),
        compiler_params=_compiler_params(("parallel",)),
    )(x, w, b)


def _call_bn_linear_stats(h, scale, shift, w, b, *, B, TB, NT):
    BP, HP = h.shape
    HO = w.shape[1]
    return pl.pallas_call(
        _make_bn_linear_stats_kernel(B, TB),
        out_shape=(jax.ShapeDtypeStruct((BP, HO), jnp.bfloat16),
                   jax.ShapeDtypeStruct((NT, 2, HO), jnp.float32)),
        grid_spec=pltpu.PrefetchScalarGridSpec(
            num_scalar_prefetch=0,
            grid=(NT,),
            in_specs=[pl.BlockSpec((TB, HP), lambda i: (i, 0)),
                      pl.BlockSpec((1, HP), lambda i: (0, 0)),
                      pl.BlockSpec((1, HP), lambda i: (0, 0)),
                      pl.BlockSpec((HP, HO), lambda i: (0, 0)),
                      pl.BlockSpec((1, HO), lambda i: (0, 0))],
            out_specs=[pl.BlockSpec((TB, HO), lambda i: (i, 0)),
                       pl.BlockSpec((1, 2, HO), lambda i: (i, 0, 0))]),
        compiler_params=_compiler_params(("parallel",)),
    )(h, scale, shift, w, b)


def _call_head(h, scale, shift, w_row, b3, *, TB, NT):
    BP, HP = h.shape
    return pl.pallas_call(
        _head_kernel,
        out_shape=jax.ShapeDtypeStruct((BP, 1), jnp.float32),
        grid_spec=pltpu.PrefetchScalarGridSpec(
            num_scalar_prefetch=0,
            grid=(NT,),
            in_specs=[pl.BlockSpec((TB, HP), lambda i: (i, 0)),
                      pl.BlockSpec((1, HP), lambda i: (0, 0)),
                      pl.BlockSpec((1, HP), lambda i: (0, 0)),
                      pl.BlockSpec((1, HP), lambda i: (0, 0)),
                      pl.BlockSpec(memory_space=pltpu.MemorySpace.SMEM)],
            out_specs=pl.BlockSpec((TB, 1), lambda i: (i, 0))),
        compiler_params=_compiler_params(("parallel",)),
    )(h, scale, shift, w_row, b3)


# ----------------------------------------------------------------------------
# Glue: batched spectral norm, BN scale/shift from partial sums, parameter init
# ----------------------------------------------------------------------------
def spectral_normalize_all(ws, n_iters=10, eps=1e-12):
    """Divide each (out, in) weight by its largest singular value.

    All weights are zero-padded to a common shape (padding does not change sigma)
    and normalized with one batched power-iteration chain instead of per-weight
    serial chains."""
    k = len(ws)
    max_o = max(w.shape[0] for w in ws)
    max_i = max(w.shape[1] for w in ws)
    wp = jnp.stack([
        jnp.pad(w.astype(jnp.float32),
                ((0, max_o - w.shape[0]), (0, max_i - w.shape[1]))) for w in ws])
    u = jnp.ones((k, max_o), jnp.float32)
    u = u / jnp.linalg.norm(u, axis=1, keepdims=True)

    def body(_, u):
        v = jnp.einsum("koi,ko->ki", wp, u)
        v = v / (jnp.linalg.norm(v, axis=1, keepdims=True) + eps)
        u = jnp.einsum("koi,ki->ko", wp, v)
        u = u / (jnp.linalg.norm(u, axis=1, keepdims=True) + eps)
        return u

    u = lax.fori_loop(0, n_iters, body, u)
    v = jnp.einsum("koi,ko->ki", wp, u)
    v = v / (jnp.linalg.norm(v, axis=1, keepdims=True) + eps)
    sigma = jnp.einsum("ko,koi,ki->k", u, wp, v)
    return [w / sigma[idx] for idx, w in enumerate(ws)]


def _stats_to_scale_shift(st, gamma_p, beta_p, batch):
    """Fold partial-sum BN stats (training mode, biased var) into scale/shift."""
    tot = jnp.sum(st, axis=0)                              # (2, HP)
    mean = tot[0:1] / batch
    var = jnp.maximum(tot[1:2] / batch - mean * mean, 0.0)
    scale = gamma_p * lax.rsqrt(var + BN_EPS)              # padded gammas are 0
    shift = beta_p - mean * scale
    return scale, shift


def init_params(key, transition_size, hidden_dim):
    ks = jax.random.split(key, 6)

    def linear(kw, kb, fan_in, fan_out):
        bound = 1.0 / jnp.sqrt(fan_in)
        w = jax.random.uniform(kw, (fan_out, fan_in), jnp.float32, -bound, bound)
        b = jax.random.uniform(kb, (fan_out,), jnp.float32, -bound, bound)
        return w, b

    w1, b1 = linear(ks[0], ks[1], transition_size, hidden_dim)
    w2, b2 = linear(ks[2], ks[3], hidden_dim, hidden_dim)
    w3, b3 = linear(ks[4], ks[5], hidden_dim, 1)
    return {
        "w1": w1, "b1": b1,
        "g1": jnp.ones((hidden_dim,), jnp.float32),
        "be1": jnp.zeros((hidden_dim,), jnp.float32),
        "w2": w2, "b2": b2,
        "g2": jnp.ones((hidden_dim,), jnp.float32),
        "be2": jnp.zeros((hidden_dim,), jnp.float32),
        "w3": w3, "b3": b3,
    }


# ----------------------------------------------------------------------------
# Forward pass
# ----------------------------------------------------------------------------
def discriminator_forward(transitions, params, *,
                          max_fused_bytes=12 * 1024 * 1024, sn_iters=10):
    """transitions: (B, transition_size) f32 -> (B, 1) f32 logits."""
    B, T = transitions.shape
    H = params["w1"].shape[0]
    TP = _round_up(T, LANE)
    HP = _round_up(H, LANE)

    # Spectral-norm re-parameterization (glue, not per-example compute).
    w1, w2, w3 = spectral_normalize_all(
        [params["w1"], params["w2"], params["w3"]], n_iters=sn_iters)
    w1p = _pad2(w1.T, TP, HP).astype(jnp.bfloat16)
    w2p = _pad2(w2.T, HP, HP).astype(jnp.bfloat16)
    w3p = _pad2(w3, 1, HP).astype(jnp.bfloat16)                  # (1, HP) row
    b1p = _pad2(params["b1"].reshape(1, -1).astype(jnp.float32), 1, HP)
    b2p = _pad2(params["b2"].reshape(1, -1).astype(jnp.float32), 1, HP)
    g1p = _pad2(params["g1"].reshape(1, -1).astype(jnp.float32), 1, HP)
    be1p = _pad2(params["be1"].reshape(1, -1).astype(jnp.float32), 1, HP)
    g2p = _pad2(params["g2"].reshape(1, -1).astype(jnp.float32), 1, HP)
    be2p = _pad2(params["be2"].reshape(1, -1).astype(jnp.float32), 1, HP)
    b3 = params["b3"].reshape(1, 1).astype(jnp.float32)

    # --- Fused single-kernel path: both hidden slabs resident in VMEM scratch. ---
    tb_f, nt_f, bp_f = _choose_tiles(B, 256)
    fused_scratch_bytes = 2 * bp_f * HP * 2                      # h1 + h2 (bf16)
    if fused_scratch_bytes <= max_fused_bytes:
        xp = jnp.pad(transitions.astype(jnp.float32),
                     ((0, bp_f - B), (0, TP - T))).astype(jnp.bfloat16)
        out = _call_fused(xp, w1p, b1p, g1p, be1p, w2p, b2p, g2p, be2p, w3p, b3,
                          B=B, TB=tb_f, NT=nt_f, HP=HP, TP=TP)
        return out[:B]

    # --- Tiled fallback: 3 batch-parallel kernels, bf16 activations + BN partials. ---
    tb, nt, bp = _choose_tiles(B, 1024, min_programs=2 if B >= 32 else 1)
    xp = jnp.pad(transitions.astype(jnp.float32),
                 ((0, bp - B), (0, TP - T))).astype(jnp.bfloat16)

    h1, st1 = _call_linear_stats(xp, w1p, b1p, B=B, TB=tb, NT=nt)
    s1, t1 = _stats_to_scale_shift(st1, g1p, be1p, B)
    h2, st2 = _call_bn_linear_stats(h1, s1, t1, w2p, b2p, B=B, TB=tb, NT=nt)
    s2, t2 = _stats_to_scale_shift(st2, g2p, be2p, B)
    out = _call_head(h2, s2, t2, w3p, b3, TB=tb, NT=nt)
    return out[:B]


def reference_forward(transitions, params, sn_iters=10):
    """Pure-JAX reference mirroring the kernel numerics (bf16 MXU operands,
    bf16-stored activations, f32 accumulation, f32 training-mode BatchNorm)."""
    w1, w2, w3 = spectral_normalize_all(
        [params["w1"], params["w2"], params["w3"]], n_iters=sn_iters)

    def bn_relu(h_bf16, g, b):
        h = h_bf16.astype(jnp.float32)
        m = jnp.mean(h, axis=0)
        v = jnp.mean(jnp.square(h - m), axis=0)   # biased, as PyTorch training BN
        return jnp.maximum((h - m) * lax.rsqrt(v + BN_EPS) * g + b, 0.0)

    x = transitions.astype(jnp.bfloat16)
    h1 = (jnp.dot(x, w1.T.astype(jnp.bfloat16),
                  preferred_element_type=jnp.float32) + params["b1"]).astype(jnp.bfloat16)
    a1 = bn_relu(h1, params["g1"], params["be1"]).astype(jnp.bfloat16)
    h2 = (jnp.dot(a1, w2.T.astype(jnp.bfloat16),
                  preferred_element_type=jnp.float32) + params["b2"]).astype(jnp.bfloat16)
    a2 = bn_relu(h2, params["g2"], params["be2"]).astype(jnp.bfloat16)
    return (jnp.dot(a2, w3.T.astype(jnp.bfloat16),
                    preferred_element_type=jnp.float32) + params["b3"])


if __name__ == "__main__":
    transition_size = 16
    hidden_dim = 32

    key = jax.random.PRNGKey(0)
    k_params, k_x, k_x2 = jax.random.split(key, 3)
    params = init_params(k_params, transition_size, hidden_dim)

    # 1) Small batch -> fully fused single-kernel path.
    batch = 8
    x = jax.random.normal(k_x, (batch, transition_size), jnp.float32)
    fused_fwd = jax.jit(lambda t, p: discriminator_forward(t, p))
    out = jax.block_until_ready(fused_fwd(x, params))
    ref = reference_forward(x, params)
    assert out.shape == (batch, 1)
    assert jnp.allclose(out, ref, atol=1e-2, rtol=1e-2), (out, ref)

    # 2) Ragged medium batch -> tiled multi-kernel path (forced), exercises the
    #    masked BN partial sums and the nearly-full last-tile heuristic.
    batch2 = 197
    x2 = jax.random.normal(k_x2, (batch2, transition_size), jnp.float32)
    tiled_fwd = jax.jit(lambda t, p: discriminator_forward(t, p, max_fused_bytes=0))
    out2 = jax.block_until_ready(tiled_fwd(x2, params))
    ref2 = reference_forward(x2, params)
    assert out2.shape == (batch2, 1)
    assert jnp.allclose(out2, ref2, atol=1e-2, rtol=1e-2), (out2, ref2)

    print("KERNEL_OK")
</pallas_src>

<mosaic_0001>
module attributes {stable_mosaic.version = 11 : i64} {
  func.func @kernel(%arg0: i32, %arg1: i32, %arg2: memref<16x128xbf16, #tpu.memory_space<vmem>>, %arg3: memref<128x128xbf16, #tpu.memory_space<vmem>>, %arg4: memref<1x128xf32, #tpu.memory_space<vmem>>, %arg5: memref<1x128xf32, #tpu.memory_space<vmem>>, %arg6: memref<1x128xf32, #tpu.memory_space<vmem>>, %arg7: memref<128x128xbf16, #tpu.memory_space<vmem>>, %arg8: memref<1x128xf32, #tpu.memory_space<vmem>>, %arg9: memref<1x128xf32, #tpu.memory_space<vmem>>, %arg10: memref<1x128xf32, #tpu.memory_space<vmem>>, %arg11: memref<1x128xbf16, #tpu.memory_space<vmem>>, %arg12: memref<1x1xf32, #tpu.memory_space<smem>>, %arg13: memref<16x1xf32, #tpu.memory_space<vmem>>, %arg14: memref<1x16x128xbf16, #tpu.memory_space<vmem>>, %arg15: memref<1x16x128xbf16, #tpu.memory_space<vmem>>, %arg16: memref<2x128xf32, #tpu.memory_space<vmem>>, %arg17: memref<2x128xf32, #tpu.memory_space<vmem>>) attributes {dimension_semantics = [#tpu.dimension_semantics<arbitrary>, #tpu.dimension_semantics<arbitrary>], iteration_bounds = array<i64: 3, 1>, scalar_prefetch = 0 : i64, scratch_operands = 4 : i64, tpu.core_type = #tpu.core_type<tc>, window_params = [{transform_indices = @transform_0, window_bounds = array<i64: 16, 128>}, {pipeline_mode = #tpu.pipeline_mode<synchronous>, transform_indices = @transform_1, window_bounds = array<i64: 128, 128>}, {pipeline_mode = #tpu.pipeline_mode<synchronous>, transform_indices = @transform_2, window_bounds = array<i64: 1, 128>}, {pipeline_mode = #tpu.pipeline_mode<synchronous>, transform_indices = @transform_3, window_bounds = array<i64: 1, 128>}, {pipeline_mode = #tpu.pipeline_mode<synchronous>, transform_indices = @transform_4, window_bounds = array<i64: 1, 128>}, {pipeline_mode = #tpu.pipeline_mode<synchronous>, transform_indices = @transform_5, window_bounds = array<i64: 128, 128>}, {pipeline_mode = #tpu.pipeline_mode<synchronous>, transform_indices = @transform_6, window_bounds = array<i64: 1, 128>}, {pipeline_mode = #tpu.pipeline_mode<synchronous>, transform_indices = @transform_7, window_bounds = array<i64: 1, 128>}, {pipeline_mode = #tpu.pipeline_mode<synchronous>, transform_indices = @transform_8, window_bounds = array<i64: 1, 128>}, {pipeline_mode = #tpu.pipeline_mode<synchronous>, transform_indices = @transform_9, window_bounds = array<i64: 1, 128>}, {transform_indices = @transform_10, window_bounds = array<i64: 1, 1>}, {transform_indices = @transform_11, window_bounds = array<i64: 16, 1>}]} {
    %c0_i32 = arith.constant 0 : i32
    %0 = arith.cmpi eq, %arg0, %c0_i32 : i32
    %c0_i32_0 = arith.constant 0 : i32
    %1 = arith.cmpi eq, %arg1, %c0_i32_0 : i32
    %2 = arith.andi %0, %1 : i1
    %3 = arith.extui %2 : i1 to i32
    %c0_i32_1 = arith.constant 0 : i32
    %4 = arith.cmpi ne, %3, %c0_i32_1 : i32
    scf.if %4 {
      %cst_7 = arith.constant 0.000000e+00 : f32
      %22 = vector.broadcast %cst_7 : f32 to vector<2x128xf32>
      %c0_8 = arith.constant 0 : index
      %c0_9 = arith.constant 0 : index
      %23 = vector.load %arg16[%c0_8, %c0_9] : memref<2x128xf32, #tpu.memory_space<vmem>>, vector<2x128xf32>
      tpu.vector_store %arg16[%c0_8, %c0_9], %22 {strides = array<i32>} : memref<2x128xf32, #tpu.memory_space<vmem>>, vector<2x128xf32>,
      %cst_10 = arith.constant 0.000000e+00 : f32
      %24 = vector.broadcast %cst_10 : f32 to vector<2x128xf32>
      %c0_11 = arith.constant 0 : index
      %c0_12 = arith.constant 0 : index
      %25 = vector.load %arg17[%c0_11, %c0_12] : memref<2x128xf32, #tpu.memory_space<vmem>>, vector<2x128xf32>
      tpu.vector_store %arg17[%c0_11, %c0_12], %24 {strides = array<i32>} : memref<2x128xf32, #tpu.memory_space<vmem>>, vector<2x128xf32>,
    } else {
    }
    %cst = arith.constant 0.000000e+00 : f32
    %5 = vector.broadcast %cst : f32 to vector<16x1xf32>
    %c0 = arith.constant 0 : index
    %c0_2 = arith.constant 0 : index
    %6 = vector.load %arg13[%c0, %c0_2] : memref<16x1xf32, #tpu.memory_space<vmem>>, vector<16x1xf32>
    tpu.vector_store %arg13[%c0, %c0_2], %5 {strides = array<i32>} : memref<16x1xf32, #tpu.memory_space<vmem>>, vector<16x1xf32>,
    %7 = tpu.iota {dimensions = array<i32: 0>} : vector<16x128xi32>
    %c16_i32 = arith.constant 16 : i32
    %8 = arith.muli %arg1, %c16_i32 : i32
    %9 = vector.broadcast %8 : i32 to vector<16x128xi32>
    %10 = arith.addi %7, %9 : vector<16x128xi32>
    %c8_i32 = arith.constant 8 : i32
    %11 = vector.broadcast %c8_i32 : i32 to vector<16x128xi32>
    %12 = arith.cmpi slt, %10, %11 : vector<16x128xi32>
    %c0_i32_3 = arith.constant 0 : i32
    %13 = arith.cmpi eq, %arg0, %c0_i32_3 : i32
    %14 = arith.extui %13 : i1 to i32
    %c0_i32_4 = arith.constant 0 : i32
    %15 = arith.cmpi ne, %14, %c0_i32_4 : i32
    scf.if %15 {
      %c0_7 = arith.constant 0 : index
      %c0_8 = arith.constant 0 : index
      %22 = vector.load %arg2[%c0_7, %c0_8] : memref<16x128xbf16, #tpu.memory_space<vmem>>, vector<16x128xbf16>
      %c0_9 = arith.constant 0 : index
      %c0_10 = arith.constant 0 : index
      %23 = vector.load %arg3[%c0_9, %c0_10] : memref<128x128xbf16, #tpu.memory_space<vmem>>, vector<128x128xbf16>
      %cst_11 = arith.constant dense<0.000000e+00> : vector<16x128xf32>
      %24 = tpu.matmul %22, %23, %cst_11 {dimension_numbers = #tpu.dot_dimension_numbers<[1], [0], [0], [1], [0, 0, 1, 1], [], []>} : vector<16x128xbf16>, vector<128x128xbf16>, vector<16x128xf32> -> vector<16x128xf32>
      %c0_12 = arith.constant 0 : index
      %c0_13 = arith.constant 0 : index
      %25 = vector.load %arg4[%c0_12, %c0_13] : memref<1x128xf32, #tpu.memory_space<vmem>>, vector<1x128xf32>
      %26 = vector.broadcast %25 : vector<1x128xf32> to vector<16x128xf32>
      %27 = arith.addf %24, %26 : vector<16x128xf32>
      %28 = arith.truncf %27 : vector<16x128xf32> to vector<16x128xbf16>
      %29 = arith.extf %28 : vector<16x128xbf16> to vector<16x128xf32>
      %cst_14 = arith.constant 0.000000e+00 : f32
      %30 = vector.broadcast %cst_14 : f32 to vector<16x128xf32>
      %31 = arith.select %12, %29, %30 : vector<16x128xi1>, vector<16x128xf32>
      %c0_15 = arith.constant 0 : index
      %c0_16 = arith.constant 0 : index
      %32 = vector.load %arg16[%c0_15, %c0_16] : memref<2x128xf32, #tpu.memory_space<vmem>>, vector<1x128xf32>
      %cst_17 = arith.constant dense<0.000000e+00> : vector<128xf32>
      %33 = vector.multi_reduction <add>, %31, %cst_17 [0] : vector<16x128xf32> to vector<128xf32>
      %34 = vector.shape_cast %33 : vector<128xf32> to vector<1x128xf32>
      %35 = arith.addf %32, %34 : vector<1x128xf32>
      %c0_18 = arith.constant 0 : index
      %c0_19 = arith.constant 0 : index
      %36 = vector.load %arg16[%c0_18, %c0_19] : memref<2x128xf32, #tpu.memory_space<vmem>>, vector<1x128xf32>
      tpu.vector_store %arg16[%c0_18, %c0_19], %35 {strides = array<i32>} : memref<2x128xf32, #tpu.memory_space<vmem>>, vector<1x128xf32>,
      %c1 = arith.constant 1 : index
      %c0_20 = arith.constant 0 : index
      %37 = vector.load %arg16[%c1, %c0_20] : memref<2x128xf32, #tpu.memory_space<vmem>>, vector<1x128xf32>
      %38 = arith.mulf %31, %29 : vector<16x128xf32>
      %cst_21 = arith.constant dense<0.000000e+00> : vector<128xf32>
      %39 = vector.multi_reduction <add>, %38, %cst_21 [0] : vector<16x128xf32> to vector<128xf32>
      %40 = vector.shape_cast %39 : vector<128xf32> to vector<1x128xf32>
      %41 = arith.addf %37, %40 : vector<1x128xf32>
      %c1_22 = arith.constant 1 : index
      %c0_23 = arith.constant 0 : index
      %42 = vector.load %arg16[%c1_22, %c0_23] : memref<2x128xf32, #tpu.memory_space<vmem>>, vector<1x128xf32>
      tpu.vector_store %arg16[%c1_22, %c0_23], %41 {strides = array<i32>} : memref<2x128xf32, #tpu.memory_space<vmem>>, vector<1x128xf32>,
      %43 = arith.index_cast %arg1 : i32 to index
      %c0_24 = arith.constant 0 : index
      %c0_25 = arith.constant 0 : index
      %44 = vector.load %arg14[%43, %c0_24, %c0_25] : memref<1x16x128xbf16, #tpu.memory_space<vmem>>, vector<1x16x128xbf16>
      %45 = vector.shape_cast %44 : vector<1x16x128xbf16> to vector<16x128xbf16>
      %46 = vector.shape_cast %28 : vector<16x128xbf16> to vector<1x16x128xbf16>
      tpu.vector_store %arg14[%43, %c0_24, %c0_25], %46 {strides = array<i32>} : memref<1x16x128xbf16, #tpu.memory_space<vmem>>, vector<1x16x128xbf16>,
    } else {
    }
    %c1_i32 = arith.constant 1 : i32
    %16 = arith.cmpi eq, %arg0, %c1_i32 : i32
    %17 = arith.extui %16 : i1 to i32
    %c0_i32_5 = arith.constant 0 : i32
    %18 = arith.cmpi ne, %17, %c0_i32_5 : i32
    scf.if %18 {
      %c0_7 = arith.constant 0 : index
      %c0_8 = arith.constant 0 : index
      %22 = vector.load %arg5[%c0_7, %c0_8] : memref<1x128xf32, #tpu.memory_space<vmem>>, vector<1x128xf32>
      %c0_9 = arith.constant 0 : index
      %c0_10 = arith.constant 0 : index
      %23 = vector.load %arg6[%c0_9, %c0_10] : memref<1x128xf32, #tpu.memory_space<vmem>>, vector<1x128xf32>
      %c0_11 = arith.constant 0 : index
      %c0_12 = arith.constant 0 : index
      %24 = vector.load %arg16[%c0_11, %c0_12] : memref<2x128xf32, #tpu.memory_space<vmem>>, vector<1x128xf32>
      %cst_13 = arith.constant 1.250000e-01 : f32
      %25 = vector.broadcast %cst_13 : f32 to vector<1x128xf32>
      %26 = arith.mulf %24, %25 : vector<1x128xf32>
      %c1 = arith.constant 1 : index
      %c0_14 = arith.constant 0 : index
      %27 = vector.load %arg16[%c1, %c0_14] : memref<2x128xf32, #tpu.memory_space<vmem>>, vector<1x128xf32>
      %cst_15 = arith.constant 1.250000e-01 : f32
      %28 = vector.broadcast %cst_15 : f32 to vector<1x128xf32>
      %29 = arith.mulf %27, %28 : vector<1x128xf32>
      %30 = arith.mulf %26, %26 : vector<1x128xf32>
      %31 = arith.subf %29, %30 : vector<1x128xf32>
      %cst_16 = arith.constant 0.000000e+00 : f32
      %32 = vector.broadcast %cst_16 : f32 to vector<1x128xf32>
      %33 = arith.maximumf %31, %32 : vector<1x128xf32>
      %cst_17 = arith.constant 9.99999974E-6 : f32
      %34 = vector.broadcast %cst_17 : f32 to vector<1x128xf32>
      %35 = arith.addf %33, %34 : vector<1x128xf32>
      %36 = math.rsqrt %35 : vector<1x128xf32>
      %37 = arith.mulf %22, %36 : vector<1x128xf32>
      %38 = arith.mulf %26, %37 : vector<1x128xf32>
      %39 = arith.subf %23, %38 : vector<1x128xf32>
      %40 = arith.index_cast %arg1 : i32 to index
      %c0_18 = arith.constant 0 : index
      %c0_19 = arith.constant 0 : index
      %41 = vector.load %arg14[%40, %c0_18, %c0_19] : memref<1x16x128xbf16, #tpu.memory_space<vmem>>, vector<1x16x128xbf16>
      %42 = vector.shape_cast %41 : vector<1x16x128xbf16> to vector<16x128xbf16>
      %43 = arith.extf %42 : vector<16x128xbf16> to vector<16x128xf32>
      %44 = vector.broadcast %37 : vector<1x128xf32> to vector<16x128xf32>
      %45 = arith.mulf %43, %44 : vector<16x128xf32>
      %46 = vector.broadcast %39 : vector<1x128xf32> to vector<16x128xf32>
      %47 = arith.addf %45, %46 : vector<16x128xf32>
      %cst_20 = arith.constant 0.000000e+00 : f32
      %48 = vector.broadcast %cst_20 : f32 to vector<16x128xf32>
      %49 = arith.maximumf %47, %48 : vector<16x128xf32>
      %50 = arith.truncf %49 : vector<16x128xf32> to vector<16x128xbf16>
      %c0_21 = arith.constant 0 : index
      %c0_22 = arith.constant 0 : index
      %51 = vector.load %arg7[%c0_21, %c0_22] : memref<128x128xbf16, #tpu.memory_space<vmem>>, vector<128x128xbf16>
      %cst_23 = arith.constant dense<0.000000e+00> : vector<16x128xf32>
      %52 = tpu.matmul %50, %51, %cst_23 {dimension_numbers = #tpu.dot_dimension_numbers<[1], [0], [0], [1], [0, 0, 1, 1], [], []>} : vector<16x128xbf16>, vector<128x128xbf16>, vector<16x128xf32> -> vector<16x128xf32>
      %c0_24 = arith.constant 0 : index
      %c0_25 = arith.constant 0 : index
      %53 = vector.load %arg8[%c0_24, %c0_25] : memref<1x128xf32, #tpu.memory_space<vmem>>, vector<1x128xf32>
      %54 = vector.broadcast %53 : vector<1x128xf32> to vector<16x128xf32>
      %55 = arith.addf %52, %54 : vector<16x128xf32>
      %56 = arith.truncf %55 : vector<16x128xf32> to vector<16x128xbf16>
      %57 = arith.extf %56 : vector<16x128xbf16> to vector<16x128xf32>
      %cst_26 = arith.constant 0.000000e+00 : f32
      %58 = vector.broadcast %cst_26 : f32 to vector<16x128xf32>
      %59 = arith.select %12, %57, %58 : vector<16x128xi1>, vector<16x128xf32>
      %c0_27 = arith.constant 0 : index
      %c0_28 = arith.constant 0 : index
      %60 = vector.load %arg17[%c0_27, %c0_28] : memref<2x128xf32, #tpu.memory_space<vmem>>, vector<1x128xf32>
      %cst_29 = arith.constant dense<0.000000e+00> : vector<128xf32>
      %61 = vector.multi_reduction <add>, %59, %cst_29 [0] : vector<16x128xf32> to vector<128xf32>
      %62 = vector.shape_cast %61 : vector<128xf32> to vector<1x128xf32>
      %63 = arith.addf %60, %62 : vector<1x128xf32>
      %c0_30 = arith.constant 0 : index
      %c0_31 = arith.constant 0 : index
      %64 = vector.load %arg17[%c0_30, %c0_31] : memref<2x128xf32, #tpu.memory_space<vmem>>, vector<1x128xf32>
      tpu.vector_store %arg17[%c0_30, %c0_31], %63 {strides = array<i32>} : memref<2x128xf32, #tpu.memory_space<vmem>>, vector<1x128xf32>,
      %c1_32 = arith.constant 1 : index
      %c0_33 = arith.constant 0 : index
      %65 = vector.load %arg17[%c1_32, %c0_33] : memref<2x128xf32, #tpu.memory_space<vmem>>, vector<1x128xf32>
      %66 = arith.mulf %59, %57 : vector<16x128xf32>
      %cst_34 = arith.constant dense<0.000000e+00> : vector<128xf32>
      %67 = vector.multi_reduction <add>, %66, %cst_34 [0] : vector<16x128xf32> to vector<128xf32>
      %68 = vector.shape_cast %67 : vector<128xf32> to vector<1x128xf32>
      %69 = arith.addf %65, %68 : vector<1x128xf32>
      %c1_35 = arith.constant 1 : index
      %c0_36 = arith.constant 0 : index
      %70 = vector.load %arg17[%c1_35, %c0_36] : memref<2x128xf32, #tpu.memory_space<vmem>>, vector<1x128xf32>
      tpu.vector_store %arg17[%c1_35, %c0_36], %69 {strides = array<i32>} : memref<2x128xf32, #tpu.memory_space<vmem>>, vector<1x128xf32>,
      %71 = arith.index_cast %arg1 : i32 to index
      %c0_37 = arith.constant 0 : index
      %c0_38 = arith.constant 0 : index
      %72 = vector.load %arg15[%71, %c0_37, %c0_38] : memref<1x16x128xbf16, #tpu.memory_space<vmem>>, vector<1x16x128xbf16>
      %73 = vector.shape_cast %72 : vector<1x16x128xbf16> to vector<16x128xbf16>
      %74 = vector.shape_cast %56 : vector<16x128xbf16> to vector<1x16x128xbf16>
      tpu.vector_store %arg15[%71, %c0_37, %c0_38], %74 {strides = array<i32>} : memref<1x16x128xbf16, #tpu.memory_space<vmem>>, vector<1x16x128xbf16>,
    } else {
    }
    %c2_i32 = arith.constant 2 : i32
    %19 = arith.cmpi eq, %arg0, %c2_i32 : i32
    %20 = arith.extui %19 : i1 to i32
    %c0_i32_6 = arith.constant 0 : i32
    %21 = arith.cmpi ne, %20, %c0_i32_6 : i32
    scf.if %21 {
      %c0_7 = arith.constant 0 : index
      %c0_8 = arith.constant 0 : index
      %22 = vector.load %arg9[%c0_7, %c0_8] : memref<1x128xf32, #tpu.memory_space<vmem>>, vector<1x128xf32>
      %c0_9 = arith.constant 0 : index
      %c0_10 = arith.constant 0 : index
      %23 = vector.load %arg10[%c0_9, %c0_10] : memref<1x128xf32, #tpu.memory_space<vmem>>, vector<1x128xf32>
      %c0_11 = arith.constant 0 : index
      %c0_12 = arith.constant 0 : index
      %24 = vector.load %arg17[%c0_11, %c0_12] : memref<2x128xf32, #tpu.memory_space<vmem>>, vector<1x128xf32>
      %cst_13 = arith.constant 1.250000e-01 : f32
      %25 = vector.broadcast %cst_13 : f32 to vector<1x128xf32>
      %26 = arith.mulf %24, %25 : vector<1x128xf32>
      %c1 = arith.constant 1 : index
      %c0_14 = arith.constant 0 : index
      %27 = vector.load %arg17[%c1, %c0_14] : memref<2x128xf32, #tpu.memory_space<vmem>>, vector<1x128xf32>
      %cst_15 = arith.constant 1.250000e-01 : f32
      %28 = vector.broadcast %cst_15 : f32 to vector<1x128xf32>
      %29 = arith.mulf %27, %28 : vector<1x128xf32>
      %30 = arith.mulf %26, %26 : vector<1x128xf32>
      %31 = arith.subf %29, %30 : vector<1x128xf32>
      %cst_16 = arith.constant 0.000000e+00 : f32
      %32 = vector.broadcast %cst_16 : f32 to vector<1x128xf32>
      %33 = arith.maximumf %31, %32 : vector<1x128xf32>
      %cst_17 = arith.constant 9.99999974E-6 : f32
      %34 = vector.broadcast %cst_17 : f32 to vector<1x128xf32>
      %35 = arith.addf %33, %34 : vector<1x128xf32>
      %36 = math.rsqrt %35 : vector<1x128xf32>
      %37 = arith.mulf %22, %36 : vector<1x128xf32>
      %38 = arith.mulf %26, %37 : vector<1x128xf32>
      %39 = arith.subf %23, %38 : vector<1x128xf32>
      %40 = arith.index_cast %arg1 : i32 to index
      %c0_18 = arith.constant 0 : index
      %c0_19 = arith.constant 0 : index
      %41 = vector.load %arg15[%40, %c0_18, %c0_19] : memref<1x16x128xbf16, #tpu.memory_space<vmem>>, vector<1x16x128xbf16>
      %42 = vector.shape_cast %41 : vector<1x16x128xbf16> to vector<16x128xbf16>
      %43 = arith.extf %42 : vector<16x128xbf16> to vector<16x128xf32>
      %44 = vector.broadcast %37 : vector<1x128xf32> to vector<16x128xf32>
      %45 = arith.mulf %43, %44 : vector<16x128xf32>
      %46 = vector.broadcast %39 : vector<1x128xf32> to vector<16x128xf32>
      %47 = arith.addf %45, %46 : vector<16x128xf32>
      %cst_20 = arith.constant 0.000000e+00 : f32
      %48 = vector.broadcast %cst_20 : f32 to vector<16x128xf32>
      %49 = arith.maximumf %47, %48 : vector<16x128xf32>
      %50 = arith.truncf %49 : vector<16x128xf32> to vector<16x128xbf16>
      %51 = arith.extf %50 : vector<16x128xbf16> to vector<16x128xf32>
      %c0_21 = arith.constant 0 : index
      %c0_22 = arith.constant 0 : index
      %52 = vector.load %arg11[%c0_21, %c0_22] : memref<1x128xbf16, #tpu.memory_space<vmem>>, vector<1x128xbf16>
      %53 = arith.extf %52 : vector<1x128xbf16> to vector<1x128xf32>
      %54 = vector.broadcast %53 : vector<1x128xf32> to vector<16x128xf32>
      %55 = arith.mulf %51, %54 : vector<16x128xf32>
      %cst_23 = arith.constant dense<0.000000e+00> : vector<16xf32>
      %56 = vector.multi_reduction <add>, %55, %cst_23 [1] : vector<16x128xf32> to vector<16xf32>
      %57 = vector.shape_cast %56 : vector<16xf32> to vector<16x1xf32>
      %c0_24 = arith.constant 0 : index
      %c0_25 = arith.constant 0 : index
      %58 = memref.load %arg12[%c0_24, %c0_25] : memref<1x1xf32, #tpu.memory_space<smem>>
      %59 = vector.broadcast %58 : f32 to vector<16x1xf32>
      %60 = arith.addf %57, %59 : vector<16x1xf32>
      %c0_26 = arith.constant 0 : index
      %c0_27 = arith.constant 0 : index
      %61 = vector.load %arg13[%c0_26, %c0_27] : memref<16x1xf32, #tpu.memory_space<vmem>>, vector<16x1xf32>
      tpu.vector_store %arg13[%c0_26, %c0_27], %60 {strides = array<i32>} : memref<16x1xf32, #tpu.memory_space<vmem>>, vector<16x1xf32>,
    } else {
    }
    return
  }
  func.func @transform_0(%arg0: i32, %arg1: i32) -> (i32, i32) {
    %c0_i32 = arith.constant 0 : i32
    %c0_i32_0 = arith.constant 0 : i32
    return %arg1, %c0_i32 : i32, i32
  }
  func.func @transform_1(%arg0: i32, %arg1: i32) -> (i32, i32) {
    %c0_i32 = arith.constant 0 : i32
    %c0_i32_0 = arith.constant 0 : i32
    %c0_i32_1 = arith.constant 0 : i32
    return %c0_i32, %c0_i32_0 : i32, i32
  }
  func.func @transform_2(%arg0: i32, %arg1: i32) -> (i32, i32) {
    %c0_i32 = arith.constant 0 : i32
    %c0_i32_0 = arith.constant 0 : i32
    %c0_i32_1 = arith.constant 0 : i32
    return %c0_i32, %c0_i32_0 : i32, i32
  }
  func.func @transform_3(%arg0: i32, %arg1: i32) -> (i32, i32) {
    %c0_i32 = arith.constant 0 : i32
    %c0_i32_0 = arith.constant 0 : i32
    %c0_i32_1 = arith.constant 0 : i32
    return %c0_i32, %c0_i32_0 : i32, i32
  }
  func.func @transform_4(%arg0: i32, %arg1: i32) -> (i32, i32) {
    %c0_i32 = arith.constant 0 : i32
    %c0_i32_0 = arith.constant 0 : i32
    %c0_i32_1 = arith.constant 0 : i32
    return %c0_i32, %c0_i32_0 : i32, i32
  }
  func.func @transform_5(%arg0: i32, %arg1: i32) -> (i32, i32) {
    %c0_i32 = arith.constant 0 : i32
    %c0_i32_0 = arith.constant 0 : i32
    %c0_i32_1 = arith.constant 0 : i32
    return %c0_i32, %c0_i32_0 : i32, i32
  }
  func.func @transform_6(%arg0: i32, %arg1: i32) -> (i32, i32) {
    %c0_i32 = arith.constant 0 : i32
    %c0_i32_0 = arith.constant 0 : i32
    %c0_i32_1 = arith.constant 0 : i32
    return %c0_i32, %c0_i32_0 : i32, i32
  }
  func.func @transform_7(%arg0: i32, %arg1: i32) -> (i32, i32) {
    %c0_i32 = arith.constant 0 : i32
    %c0_i32_0 = arith.constant 0 : i32
    %c0_i32_1 = arith.constant 0 : i32
    return %c0_i32, %c0_i32_0 : i32, i32
  }
  func.func @transform_8(%arg0: i32, %arg1: i32) -> (i32, i32) {
    %c0_i32 = arith.constant 0 : i32
    %c0_i32_0 = arith.constant 0 : i32
    %c0_i32_1 = arith.constant 0 : i32
    return %c0_i32, %c0_i32_0 : i32, i32
  }
  func.func @transform_9(%arg0: i32, %arg1: i32) -> (i32, i32) {
    %c0_i32 = arith.constant 0 : i32
    %c0_i32_0 = arith.constant 0 : i32
    %c0_i32_1 = arith.constant 0 : i32
    return %c0_i32, %c0_i32_0 : i32, i32
  }
  func.func @transform_10(%arg0: i32, %arg1: i32) -> (i32, i32) {
    %c0_i32 = arith.constant 0 : i32
    %c0_i32_0 = arith.constant 0 : i32
    %c0_i32_1 = arith.constant 0 : i32
    return %c0_i32, %c0_i32_0 : i32, i32
  }
  func.func @transform_11(%arg0: i32, %arg1: i32) -> (i32, i32) {
    %c0_i32 = arith.constant 0 : i32
    %c0_i32_0 = arith.constant 0 : i32
    return %arg1, %c0_i32 : i32, i32
  }
}

</mosaic_0001>

<bundles_post_ra>
// kernel: custom-call
= control target key start
LH: loop header
LB: loop body
LE: loop exit
PB: predicated region body
PF: predicated region fallthrough
CT: control target
= control target key end

     0   :  { %s6_s0 = inlined_call_operand.vmem [shape: f32[3,32], index: 0, kind: output, shape index: {}]  }

// kernel: _lambda_.1
= control target key start
LH: loop header
LB: loop body
LE: loop exit
PB: predicated region body
PF: predicated region fallthrough
CT: control target
= control target key end

     0   :  { %s1085_s19 = smov 0   ;;  %s1087_s20 = smov 0   ;;  %s1206_s0 = inlined_call_operand.vmem [shape: bf16[16,128], index: 0, kind: input, shape index: {}]   ;;  %s1207_s1 = inlined_call_operand.vmem [shape: bf16[128,128], index: 1, kind: input, shape index: {}]   ;;  %s1208_s2 = inlined_call_operand.vmem [shape: f32[1,128], index: 2, kind: input, shape index: {}]   ;;  %s1209_s3 = inlined_call_operand.vmem [shape: f32[1,128], index: 3, kind: input, shape index: {}]   ;;  %s1210_s4 = inlined_call_operand.vmem [shape: f32[1,128], index: 4, kind: input, shape index: {}]   ;;  %s1211_s5 = inlined_call_operand.vmem [shape: bf16[128,128], index: 5, kind: input, shape index: {}]   ;;  %s1212_s6 = inlined_call_operand.vmem [shape: f32[1,128], index: 6, kind: input, shape index: {}]   ;;  %s1213_s7 = inlined_call_operand.vmem [shape: f32[1,128], index: 7, kind: input, shape index: {}]   ;;  %s1214_s8 = inlined_call_operand.vmem [shape: f32[1,128], index: 8, kind: input, shape index: {}]   ;;  %s1215_s9 = inlined_call_operand.vmem [shape: bf16[1,128], index: 9, kind: input, shape index: {}]   ;;  %s1216_s10 = inlined_call_operand.<no memory space> [shape: f32[1,1], index: 10, kind: input, shape index: {}]   ;;  %s1217_s11 = inlined_call_operand.vmem [shape: f32[16,1], index: 11, kind: output, shape index: {}]  }
   0x1   :  { %16 = sst [smem:[#allocation6]] %s1216_s10  ;;  %s1089_s21 = smov 0  }
   0x2 LB: > { %s34_s10 = sadd.s32 1, %s1014_s20  ;;  %p851_p0 = scmp.ge.s32.totalorder %s1018_s21, 1  ;;  %s1018_s21 = sphi %s1089_s21, %s22_s21   ;;  %s1014_s20 = sphi %s1087_s20, %s1219_s20   ;;  %s1010_s19 = sphi %s1085_s19, %s1218_s19  }
   0x3   : > { %p36_p1 = scmp.ge.s32.totalorder %s34_s10, 3  ;;  %p351_p2 = scmp.lt.s32.totalorder %s1018_s21, 4 }
   0x5   : > { %s1221_s10 = smov (%p36_p1, %s34_s10), 0  ;;  %p352_p3 = pnand %p851_p0, %p351_p2 }
   0x6   : > { %p403_p4 = scmp.eq.s32.totalorder (!%p352_p3), %s1010_s19, 0 }
   0x7   : > { %355 = sbr.rel (%p352_p3) target bundleno = 606 (0x25e), region = 64 }
   0xc   : > { %408 = sbr.rel (!%p403_p4) target bundleno = 17 (0x11), region = 68  ;;  %v1020_v0 = vmov (%p403_p4), 0.0  }
   0xd   : > { %409 = vst [vmem:[#allocation4] sm:$0x3] (%p403_p4), %v1020_v0 }
   0xe   : > { %410 = vst [vmem:[#allocation5] sm:$0x3] (%p403_p4), %v1020_v0 }
  0x11 PF: > { %vm411_vm0 = vcmask 7168   ;;  %v1021_v1 = vmov 0.0   ;;  %p853_p5 = scmp.ne.s32.totalorder %s1010_s19, 0 }
  0x12   : > { %412 = vst.msk [vmem:[%s1217_s11] sm:$0xff] %vm411_vm0, %v1021_v1 }
  0x13   : > { %413 = vst.msk [vmem:[%s1217_s11 + $0x8] sm:$0xff] %vm411_vm0, %v1021_v1  ;;  %425 = sbr.rel (%p853_p5) target bundleno = 215 (0xd7), region = 72 }
  0x18   : > { %v937_v2 = vld [vmem:[%s1207_s1 + $0x38] sm:$0xff]  ;;  %v936_v3 = vld [vmem:[%s1207_s1 + $0x30] sm:$0xff]  ;;  %v935_v4 = vld [vmem:[%s1207_s1 + $0x28] sm:$0xff] }
  0x19   : > { %502 = vmatpush.bf16.msra.mxu0 %v937_v2  ;;  %v934_v5 = vld [vmem:[%s1207_s1 + $0x20] sm:$0xff]  ;;  %v933_v6 = vld [vmem:[%s1207_s1 + $0x18] sm:$0xff]  ;;  %v932_v7 = vld [vmem:[%s1207_s1 + $0x10] sm:$0xff] }
  0x1a   : > { %v931_v8 = vld [vmem:[%s1207_s1 + $0x8] sm:$0xff]  ;;  %v930_v9 = vld [vmem:[%s1207_s1] sm:$0xff]  ;;  %v522_v28 = vld [vmem:[#allocation4] sm:$0x1] }
  0x1b   : > { %v929_v10 = vld [vmem:[%s1206_s0] sm:$0xff]  ;;  %v532_v37 = vld [vmem:[#allocation4 + $0x1] sm:$0x1] }
  0x1c   : > { %v990_v11 = vld [vmem:[%s1208_s2] ss:$0 sm:$0xff] }
  0x1d   : > { %503 = vmatpush.bf16.msra.mxu0 %v936_v3 }
  0x21   : > { %504 = vmatpush.bf16.msra.mxu0 %v935_v4 }
  0x25   : > { %505 = vmatpush.bf16.msra.mxu0 %v934_v5 }
  0x29   : > { %506 = vmatpush.bf16.msra.mxu0 %v933_v6 }
  0x2d   : > { %507 = vmatpush.bf16.msra.mxu0 %v932_v7 }
  0x31   : > { %508 = vmatpush.bf16.msra.mxu0 %v931_v8 }
  0x35   : > { %509 = vmatpush.bf16.msra.mxu0 %v930_v9 }
  0x38   : > { %510 = vmatmul.bf16.vlgmr.msra.gmra.mxu0 %v929_v10 }
  0xb5   : > { %v511_v12 = vpop.f32.mrf.mxu0 }
  0xb6   : > { %v512_v13 = vadd.f32 %v990_v11, %v511_v12 }
  0xb8   : > { %v516_v14 = vpack.c.bf16 %v512_v13, %v512_v13 }
  0xba   : > { %v518_v15 = vunpack.c.l.bf16 %v516_v14 }
  0xbc   : > { %v524_v16 = vrot.slane %v518_v15, 4  ;;  %v533_v26 = vmul.f32 %v518_v15, %v518_v15 }
  0xbd   : > { %v513_v17 = vpop.f32.mrf.mxu0 }
  0xbe   : > { %v525_v18 = vadd.f32 %v524_v16, %v518_v15  ;;  %v514_v19 = vadd.f32 %v990_v11, %v513_v17 }
  0xc0   : > { %v526_v20 = vrot.slane %v525_v18, 2  ;;  %v517_v21 = vpack.c.bf16 %v514_v19, %v514_v19  ;;  %v949_v22 = vpack.c.bf16 %v514_v19, %v512_v13 }
  0xc2   : > { %v527_v23 = vadd.f32 %v526_v20, %v525_v18  ;;  %v519_v24 = vunpack.c.l.bf16 %v517_v21  ;;  %950 = vst [vmem:[#allocation2] sm:$0xff] %v949_v22  }
  0xc4   : > { %v528_v25 = vrot.slane %v527_v23, 1  ;;  %v534_v27 = vmul.f32 0.0, %v519_v24 }
  0xc6   : > { %v529_v29 = vadd.f32 %v528_v25, %v527_v23  ;;  %v535_v30 = vadd.f32 %v534_v27, %v533_v26 }
  0xc8   : > { %v530_v31 = vadd.f32 %v529_v29, %v522_v28  ;;  %v536_v32 = vrot.slane %v535_v30, 4 }
  0xca   : > { %531 = vst [vmem:[#allocation4] sm:$0x1] %v530_v31  ;;  %v537_v33 = vadd.f32 %v536_v32, %v535_v30 }
  0xcc   : > { %v538_v34 = vrot.slane %v537_v33, 2 }
  0xce   : > { %v539_v35 = vadd.f32 %v538_v34, %v537_v33 }
  0xd0   : > { %v540_v36 = vrot.slane %v539_v35, 1 }
  0xd2   : > { %v541_v38 = vadd.f32 %v540_v36, %v539_v35 }
  0xd4   : > { %v542_v39 = vadd.f32 %v541_v38, %v532_v37 }
  0xd6   : > { %543 = vst [vmem:[#allocation4 + $0x1] sm:$0x1] %v542_v39 }
  0xd7 PF: > { %p890_p6 = scmp.ne.s32.totalorder %s1010_s19, 1 }
  0xd9   : > { %552 = sbr.rel (%p890_p6) target bundleno = 425 (0x1a9), region = 76 }
  0xde   : > { %v945_v40 = vld [vmem:[%s1211_s5 + $0x38] sm:$0xff]  ;;  %v944_v41 = vld [vmem:[%s1211_s5 + $0x30] sm:$0xff]  ;;  %v943_v46 = vld [vmem:[%s1211_s5 + $0x28] sm:$0xff] }
  0xdf   : > { %664 = vmatpush.bf16.msra.mxu0 %v945_v40  ;;  %v555_v42 = vld [vmem:[#allocation4] sm:$0x1]  ;;  %v557_v43 = vld [vmem:[#allocation4 + $0x1] sm:$0x1]  ;;  %v942_v49 = vld [vmem:[%s1211_s5 + $0x20] sm:$0xff] }
  0xe0   : > { %v556_v44 = vmul.f32 0.125, %v555_v42  ;;  %v558_v45 = vmul.f32 0.125, %v557_v43  ;;  %v941_v52 = vld [vmem:[%s1211_s5 + $0x18] sm:$0xff]  ;;  %v940_v53 = vld [vmem:[%s1211_s5 + $0x10] sm:$0xff]  ;;  %v939_v56 = vld [vmem:[%s1211_s5 + $0x8] sm:$0xff] }
  0xe1   : > { %v938_v59 = vld [vmem:[%s1211_s5] sm:$0xff]  ;;  %v684_v33 = vld [vmem:[#allocation5] sm:$0x1]  ;;  %v694_v42 = vld [vmem:[#allocation5 + $0x1] sm:$0x1] }
  0xe2   : > { %v559_v47 = vmul.f32 %v556_v44, %v556_v44  ;;  %v553_v61 = vld [vmem:[%s1209_s3] sm:$0x1] }
  0xe3   : > { %665 = vmatpush.bf16.msra.mxu0 %v944_v41  ;;  %v952_v63 = vld [vmem:[#allocation2] sm:$0xff]  }
  0xe4   : > { %v560_v48 = vsub.f32 %v558_v45, %v559_v47  ;;  %v953_v2 = vunpack.c.l.bf16 %v952_v63  ;;  %v954_v3 = vunpack.c.h.bf16 %v952_v63  ;;  %v554_v4 = vld [vmem:[%s1210_s4] sm:$0x1] }
  0xe5   : > { %v991_v16 = vld [vmem:[%s1212_s6] ss:$0 sm:$0xff] }
  0xe6   : > { %v561_v50 = vmax.f32 %v560_v48, 0.0 }
  0xe7   : > { %666 = vmatpush.bf16.msra.mxu0 %v943_v46 }
  0xe8   : > { %v562_v51 = vadd.f32 1e-05, %v561_v50 }
  0xea   : > { %992 = vrsqrt.f32 %v562_v51  ;;  %vm569_vm1 = vweird.f32 %v562_v51 }
  0xeb   : > { %667 = vmatpush.bf16.msra.mxu0 %v942_v49 }
  0xef   : > { %668 = vmatpush.bf16.msra.mxu0 %v941_v52 }
  0xf0   : > { %v993_v54 = vpop.eup %992 }
  0xf1   : > { %v564_v55 = vmul.f32 %v993_v54, %v562_v51  ;;  %vm570_vm2 = vweird.f32 %v993_v54 }
  0xf2   : > { %vm571_vm3 = vmor %vm569_vm1, %vm570_vm2 }
  0xf3   : > { %669 = vmatpush.bf16.msra.mxu0 %v940_v53  ;;  %v565_v57 = vmul.f32 %v993_v54, %v564_v55 }
  0xf5   : > { %v566_v58 = vmul.f32 0.5, %v565_v57 }
  0xf7   : > { %670 = vmatpush.bf16.msra.mxu0 %v939_v56  ;;  %v567_v60 = vsub.f32 1.5, %v566_v58 }
  0xf9   : > { %v568_v62 = vmul.f32 %v993_v54, %v567_v60 }
  0xfb   : > { %671 = vmatpush.bf16.msra.mxu0 %v938_v59  ;;  %v572_v0 = vsel %vm571_vm3, %v993_v54, %v568_v62 }
  0xfc   : > { %v573_v1 = vmul.f32 %v572_v0, %v553_v61 }
  0xfe   : > { %v574_v5 = vmul.f32 %v573_v1, %v556_v44  ;;  %v584_v6 = vperm.slane %v573_v1, 0 }
 0x100   : > { %v575_v7 = vsub.f32 %v554_v4, %v574_v5  ;;  %v586_v8 = vmul.f32 %v953_v2, %v584_v6  ;;  %v587_v9 = vmul.f32 %v954_v3, %v584_v6 }
 0x102   : > { %v589_v10 = vperm.slane %v575_v7, 0 }
 0x104   : > { %v591_v11 = vadd.f32 %v589_v10, %v586_v8  ;;  %v592_v12 = vadd.f32 %v589_v10, %v587_v9 }
 0x106   : > { %v593_v13 = vmax.f32 %v591_v11, 0.0  ;;  %v594_v14 = vmax.f32 %v592_v12, 0.0 }
 0x108   : > { %v595_v15 = vpack.c.bf16 %v594_v14, %v593_v13 }
 0x10a   : > { %672 = vmatmul.bf16.vlgmr.msra.gmra.mxu0 %v595_v15 }
 0x187   : > { %v673_v17 = vpop.f32.mrf.mxu0 }
 0x188   : > { %v674_v18 = vadd.f32 %v991_v16, %v673_v17 }
 0x18a   : > { %v678_v19 = vpack.c.bf16 %v674_v18, %v674_v18 }
 0x18c   : > { %v680_v20 = vunpack.c.l.bf16 %v678_v19 }
 0x18e   : > { %v686_v21 = vrot.slane %v680_v20, 4  ;;  %v695_v31 = vmul.f32 %v680_v20, %v680_v20 }
 0x18f   : > { %v675_v22 = vpop.f32.mrf.mxu0 }
 0x190   : > { %v687_v23 = vadd.f32 %v686_v21, %v680_v20  ;;  %v676_v24 = vadd.f32 %v991_v16, %v675_v22 }
 0x192   : > { %v688_v25 = vrot.slane %v687_v23, 2  ;;  %v679_v26 = vpack.c.bf16 %v676_v24, %v676_v24  ;;  %v958_v27 = vpack.c.bf16 %v676_v24, %v674_v18 }
 0x194   : > { %v689_v28 = vadd.f32 %v688_v25, %v687_v23  ;;  %v681_v29 = vunpack.c.l.bf16 %v679_v26  ;;  %959 = vst [vmem:[#allocation3] sm:$0xff] %v958_v27  }
 0x196   : > { %v690_v30 = vrot.slane %v689_v28, 1  ;;  %v696_v32 = vmul.f32 0.0, %v681_v29 }
 0x198   : > { %v691_v34 = vadd.f32 %v690_v30, %v689_v28  ;;  %v697_v35 = vadd.f32 %v696_v32, %v695_v31 }
 0x19a   : > { %v692_v36 = vadd.f32 %v691_v34, %v684_v33  ;;  %v698_v37 = vrot.slane %v697_v35, 4 }
 0x19c   : > { %693 = vst [vmem:[#allocation5] sm:$0x1] %v692_v36  ;;  %v699_v38 = vadd.f32 %v698_v37, %v697_v35 }
 0x19e   : > { %v700_v39 = vrot.slane %v699_v38, 2 }
 0x1a0   : > { %v701_v40 = vadd.f32 %v700_v39, %v699_v38 }
 0x1a2   : > { %v702_v41 = vrot.slane %v701_v40, 1 }
 0x1a4   : > { %v703_v43 = vadd.f32 %v702_v41, %v701_v40 }
 0x1a6   : > { %v704_v44 = vadd.f32 %v703_v43, %v694_v42 }
 0x1a8   : > { %705 = vst [vmem:[#allocation5 + $0x1] sm:$0x1] %v704_v44 }
 0x1a9 PF: > { %p923_p7 = scmp.ne.s32.totalorder %s1010_s19, 2 }
 0x1aa   : > { %s769_s25 = sld [smem:[#allocation6]] (!%p923_p7) }
 0x1ab   : > { %713 = sbr.rel (%p923_p7) target bundleno = 606 (0x25e), region = 80 }
 0x1b0   : > { %v716_v45 = vld [vmem:[#allocation5] sm:$0x1]  ;;  %v718_v47 = vld [vmem:[#allocation5 + $0x1] sm:$0x1]  ;;  %v714_v58 = vld [vmem:[%s1213_s7] sm:$0x1]  ;;  %v770_v21 = vstv %s769_s25 }
 0x1b1   : > { %v717_v46 = vmul.f32 0.125, %v716_v45  ;;  %v719_v48 = vmul.f32 0.125, %v718_v47  ;;  %v961_v60 = vld [vmem:[#allocation3] sm:$0xff]   ;;  %v715_v1 = vld [vmem:[%s1214_s8] sm:$0x1] }
 0x1b2   : > { %v962_v63 = vunpack.c.l.bf16 %v961_v60  ;;  %v963_v0 = vunpack.c.h.bf16 %v961_v60  ;;  %v760_v7 = vld [vmem:[%s1215_s9] sm:$0x1] }
 0x1b3   : > { %v720_v49 = vmul.f32 %v717_v46, %v717_v46  ;;  %v761_v10 = vunpack.c.l.bf16 %v760_v7 }
 0x1b5   : > { %v721_v50 = vsub.f32 %v719_v48, %v720_v49  ;;  %v762_v15 = vperm.slane %v761_v10, 0 }
 0x1b7   : > { %v722_v51 = vmax.f32 %v721_v50, 0.0 }
 0x1b9   : > { %v723_v52 = vadd.f32 1e-05, %v722_v51 }
 0x1bb   : > { %994 = vrsqrt.f32 %v723_v52  ;;  %vm730_vm4 = vweird.f32 %v723_v52 }
 0x1c1   : > { %v995_v53 = vpop.eup %994 }
 0x1c2   : > { %v725_v54 = vmul.f32 %v995_v53, %v723_v52  ;;  %vm731_vm5 = vweird.f32 %v995_v53 }
 0x1c3   : > { %vm732_vm6 = vmor %vm730_vm4, %vm731_vm5 }
 0x1c4   : > { %v726_v55 = vmul.f32 %v995_v53, %v725_v54 }
 0x1c6   : > { %v727_v56 = vmul.f32 0.5, %v726_v55 }
 0x1c8   : > { %v728_v57 = vsub.f32 1.5, %v727_v56 }
 0x1ca   : > { %v729_v59 = vmul.f32 %v995_v53, %v728_v57 }
 0x1cc   : > { %v733_v61 = vsel %vm732_vm6, %v995_v53, %v729_v59 }
 0x1cd   : > { %v734_v62 = vmul.f32 %v733_v61, %v714_v58 }
 0x1cf   : > { %v735_v2 = vmul.f32 %v734_v62, %v717_v46  ;;  %v745_v3 = vperm.slane %v734_v62, 0 }
 0x1d1   : > { %v736_v4 = vsub.f32 %v715_v1, %v735_v2  ;;  %v747_v5 = vmul.f32 %v962_v63, %v745_v3  ;;  %v748_v6 = vmul.f32 %v963_v0, %v745_v3 }
 0x1d3   : > { %v750_v8 = vperm.slane %v736_v4, 0 }
 0x1d5   : > { %v752_v9 = vadd.f32 %v750_v8, %v747_v5  ;;  %v753_v11 = vadd.f32 %v750_v8, %v748_v6 }
 0x1d7   : > { %v754_v12 = vmax.f32 %v752_v9, 0.0  ;;  %v755_v13 = vmax.f32 %v753_v11, 0.0 }
 0x1d9   : > { %v756_v14 = vpack.c.bf16 %v754_v12, %v754_v12  ;;  %v757_v17 = vpack.c.bf16 %v755_v13, %v755_v13 }
 0x1db   : > { %v758_v16 = vunpack.c.l.bf16 %v756_v14  ;;  %v759_v19 = vunpack.c.l.bf16 %v757_v17 }
 0x1dd   : > { %v763_v18 = vmul.f32 %v762_v15, %v758_v16  ;;  %v764_v20 = vmul.f32 %v762_v15, %v759_v19 }
 0x1df   : > { %765 = vadd.xlane.f32.xlu0 %v763_v18 }
 0x1e7   : > { %767 = vadd.xlane.f32.xlu0 %v764_v20 }
 0x252   : > { %v766_v22 = vpop.xlane.xlu0 %765 }
 0x253   : > { %v771_v23 = vadd.f32 %v770_v21, %v766_v22 }
 0x255   : > { %773 = vst.msk [vmem:[%s1217_s11] sm:$0xff] %vm411_vm0, %v771_v23 }
 0x25a   : > { %v768_v24 = vpop.xlane.xlu0 %767 }
 0x25b   : > { %v772_v25 = vadd.f32 %v770_v21, %v768_v24 }
 0x25d   : > { %774 = vst.msk [vmem:[%s1217_s11 + $0x8] sm:$0xff] %vm411_vm0, %v772_v25 }
 0x25e PF: > { %s22_s21 = sadd.s32 1, %s1018_s21   ;;  %s1218_s19 = smov %s1014_s20 }
 0x25f   : > { %p19_p8 = scmp.ge.s32.totalorder %s22_s21, 5   ;;  %s1219_s20 = smov %s1221_s10 }
 0x261   :  { %21 = sbr.rel (!%p19_p8) target bundleno = 2 (0x2), region = 114 }

</bundles_post_ra>
